<compile_context>
chip_gen: v7x
topology: tpu7x:2x2x1
jax: 0.10.0
libtpu: 0.0.40
codegen_flags: <defaults>
</compile_context>

<pallas_src>
import functools

import jax
import jax.numpy as jnp
from jax.experimental import pallas as pl
from jax.experimental.pallas import tpu as pltpu


def _conv1x1_kernel(w_ref, x_ref, o_ref, *, use_vpu):
    """w_ref: (Cout, Cin); x_ref: (1, Cin, TL); o_ref: (1, Cout, TL)."""
    w = w_ref[...]          # (Cout, Cin)
    x = x_ref[0]            # (Cin, TL)   -- lane dim is the (large) flattened spatial dim
    if use_vpu:
        # Tiny K/N: skip the MXU entirely; Cin broadcast-FMAs across lane-dense vregs.
        cin = w.shape[1]
        acc = w[:, 0:1] * x[0:1, :]                       # (Cout, TL)
        for c in range(1, cin):                           # static unroll (cin is small)
            acc = acc + w[:, c:c + 1] * x[c:c + 1, :]
        o_ref[0] = acc.astype(o_ref.dtype)
    else:
        o_ref[0] = jnp.dot(w, x, preferred_element_type=jnp.float32).astype(o_ref.dtype)


def downsample_c(x, weight, stride):
    """Forward pass of DownsampleC.

    x:      (N, Cin, H, W)    float32, NCHW (PyTorch convention)
    weight: (Cout, Cin, 1, 1) float32, PyTorch Conv2d weight layout
    returns (N, Cout, Ho, Wo) with Ho/Wo given by ::stride slicing (kernel=1, pad=0)
    """
    n, cin, h, w = x.shape
    cout = weight.shape[0]

    # 1) strided spatial subsample (1x1 kernel, padding=0 -> keep every stride-th pixel)
    xs = x[:, :, ::stride, ::stride] if stride != 1 else x
    ho, wo = xs.shape[2], xs.shape[3]
    l = ho * wo

    # 2) channels-first, spatial flattened last -> free reshapes, NO transposes
    xf = xs.reshape(n, cin, l)              # (N, Cin, L)
    wf = weight.reshape(cout, cin)          # (Cout, Cin)

    # Large lane tile: either the whole spatial extent (legal: == full dim) or a
    # multiple of 128 (legal: aligned), with cdiv-masked edge tiles.
    tl = l if l <= 2048 else 2048
    grid = (n, pl.cdiv(l, tl))

    itemsize = x.dtype.itemsize
    cost = pl.CostEstimate(
        flops=2 * n * l * cin * cout,
        transcendentals=0,
        bytes_accessed=(n * cin * l + cin * cout + n * cout * l) * itemsize,
    )

    out_flat = pl.pallas_call(
        functools.partial(_conv1x1_kernel, use_vpu=(cin <= 32)),
        out_shape=jax.ShapeDtypeStruct((n, cout, l), x.dtype),
        grid_spec=pltpu.PrefetchScalarGridSpec(
            num_scalar_prefetch=0,
            grid=grid,
            in_specs=[
                # weight: constant index_map -> same tiny block every step
                pl.BlockSpec((cout, cin), lambda b, j: (0, 0)),
                # activations: one batch, full Cin, a wide lane tile of spatial
                pl.BlockSpec((1, cin, tl), lambda b, j: (b, 0, j)),
            ],
            out_specs=pl.BlockSpec((1, cout, tl), lambda b, j: (b, 0, j)),
        ),
        compiler_params=pltpu.CompilerParams(
            dimension_semantics=("parallel", "parallel"),
            vmem_limit_bytes=32 * 1024 * 1024,
        ),
        cost_estimate=cost,
    )(wf, xf)

    # 3) (N, Cout, Ho*Wo) -> (N, Cout, Ho, Wo): trailing-dim split, no data movement.
    return out_flat.reshape(n, cout, ho, wo)


def reference(x, weight, stride):
    # pure-JAX reference: strided 1x1 conv, no bias
    xs = x[:, :, ::stride, ::stride]
    wf = weight.reshape(weight.shape[0], weight.shape[1])
    return jnp.einsum("nchw,oc->nohw", xs, wf)


if __name__ == "__main__":
    key = jax.random.PRNGKey(0)
    k_x, k_w = jax.random.split(key)

    # DownsampleC(nIn=4, nOut=8, stride=2)
    n_in, n_out, stride = 4, 8, 2
    x = jax.random.normal(k_x, (2, n_in, 16, 16), dtype=jnp.float32)

    # deterministic Conv2d-style weight init (kaiming-uniform-ish bound)
    fan_in = n_in * 1 * 1
    bound = 1.0 / (fan_in ** 0.5)
    weight = jax.random.uniform(
        k_w, (n_out, n_in, 1, 1), dtype=jnp.float32, minval=-bound, maxval=bound
    )

    fwd = jax.jit(downsample_c, static_argnames=("stride",))
    out = fwd(x, weight, stride=stride)
    out = jax.block_until_ready(out)

    ref = reference(x, weight, stride)
    assert out.shape == (2, n_out, 8, 8), out.shape
    assert jnp.allclose(out, ref, atol=1e-5, rtol=1e-5), "mismatch vs reference"

    print("KERNEL_OK")
</pallas_src>

<mosaic_0001>
module attributes {stable_mosaic.version = 11 : i64} {
  func.func @_conv1x1_kernel(%arg0: i32, %arg1: i32, %arg2: memref<8x4xf32, #tpu.memory_space<vmem>>, %arg3: memref<1x4x64xf32, #tpu.memory_space<vmem>>, %arg4: memref<1x8x64xf32, #tpu.memory_space<vmem>>) attributes {dimension_semantics = [#tpu.dimension_semantics<parallel>, #tpu.dimension_semantics<parallel>], iteration_bounds = array<i64: 2, 1>, scalar_prefetch = 0 : i64, scratch_operands = 0 : i64, tpu.core_type = #tpu.core_type<tc>, window_params = [{pipeline_mode = #tpu.pipeline_mode<synchronous>, transform_indices = @transform_0, window_bounds = array<i64: 8, 4>}, {transform_indices = @transform_1, window_bounds = array<i64: 1, 4, 64>}, {transform_indices = @transform_2, window_bounds = array<i64: 1, 8, 64>}]} {
    %c0 = arith.constant 0 : index
    %c0_0 = arith.constant 0 : index
    %0 = vector.load %arg2[%c0, %c0_0] : memref<8x4xf32, #tpu.memory_space<vmem>>, vector<8x4xf32>
    %c0_1 = arith.constant 0 : index
    %c0_2 = arith.constant 0 : index
    %c0_3 = arith.constant 0 : index
    %1 = vector.load %arg3[%c0_1, %c0_2, %c0_3] : memref<1x4x64xf32, #tpu.memory_space<vmem>>, vector<1x4x64xf32>
    %2 = vector.shape_cast %1 : vector<1x4x64xf32> to vector<4x64xf32>
    %3 = vector.extract_strided_slice %0 {offsets = [0, 0], sizes = [8, 1], strides = [1, 1]} : vector<8x4xf32> to vector<8x1xf32>
    %4 = vector.extract_strided_slice %2 {offsets = [0, 0], sizes = [1, 64], strides = [1, 1]} : vector<4x64xf32> to vector<1x64xf32>
    %5 = vector.broadcast %3 : vector<8x1xf32> to vector<8x64xf32>
    %6 = vector.broadcast %4 : vector<1x64xf32> to vector<8x64xf32>
    %7 = arith.mulf %5, %6 : vector<8x64xf32>
    %8 = vector.extract_strided_slice %0 {offsets = [0, 1], sizes = [8, 1], strides = [1, 1]} : vector<8x4xf32> to vector<8x1xf32>
    %9 = vector.extract_strided_slice %2 {offsets = [1, 0], sizes = [1, 64], strides = [1, 1]} : vector<4x64xf32> to vector<1x64xf32>
    %10 = vector.broadcast %8 : vector<8x1xf32> to vector<8x64xf32>
    %11 = vector.broadcast %9 : vector<1x64xf32> to vector<8x64xf32>
    %12 = arith.mulf %10, %11 : vector<8x64xf32>
    %13 = arith.addf %7, %12 : vector<8x64xf32>
    %14 = vector.extract_strided_slice %0 {offsets = [0, 2], sizes = [8, 1], strides = [1, 1]} : vector<8x4xf32> to vector<8x1xf32>
    %15 = vector.extract_strided_slice %2 {offsets = [2, 0], sizes = [1, 64], strides = [1, 1]} : vector<4x64xf32> to vector<1x64xf32>
    %16 = vector.broadcast %14 : vector<8x1xf32> to vector<8x64xf32>
    %17 = vector.broadcast %15 : vector<1x64xf32> to vector<8x64xf32>
    %18 = arith.mulf %16, %17 : vector<8x64xf32>
    %19 = arith.addf %13, %18 : vector<8x64xf32>
    %20 = vector.extract_strided_slice %0 {offsets = [0, 3], sizes = [8, 1], strides = [1, 1]} : vector<8x4xf32> to vector<8x1xf32>
    %21 = vector.extract_strided_slice %2 {offsets = [3, 0], sizes = [1, 64], strides = [1, 1]} : vector<4x64xf32> to vector<1x64xf32>
    %22 = vector.broadcast %20 : vector<8x1xf32> to vector<8x64xf32>
    %23 = vector.broadcast %21 : vector<1x64xf32> to vector<8x64xf32>
    %24 = arith.mulf %22, %23 : vector<8x64xf32>
    %25 = arith.addf %19, %24 : vector<8x64xf32>
    %c0_4 = arith.constant 0 : index
    %c0_5 = arith.constant 0 : index
    %c0_6 = arith.constant 0 : index
    %26 = vector.load %arg4[%c0_4, %c0_5, %c0_6] : memref<1x8x64xf32, #tpu.memory_space<vmem>>, vector<1x8x64xf32>
    %27 = vector.shape_cast %26 : vector<1x8x64xf32> to vector<8x64xf32>
    %28 = vector.shape_cast %25 : vector<8x64xf32> to vector<1x8x64xf32>
    tpu.vector_store %arg4[%c0_4, %c0_5, %c0_6], %28 {strides = array<i32>} : memref<1x8x64xf32, #tpu.memory_space<vmem>>, vector<1x8x64xf32>,
    return
  }
  func.func @transform_0(%arg0: i32, %arg1: i32) -> (i32, i32) {
    %c0_i32 = arith.constant 0 : i32
    %c0_i32_0 = arith.constant 0 : i32
    %c0_i32_1 = arith.constant 0 : i32
    return %c0_i32, %c0_i32_0 : i32, i32
  }
  func.func @transform_1(%arg0: i32, %arg1: i32) -> (i32, i32, i32) {
    %c0_i32 = arith.constant 0 : i32
    %c0_i32_0 = arith.constant 0 : i32
    return %arg0, %c0_i32, %arg1 : i32, i32, i32
  }
  func.func @transform_2(%arg0: i32, %arg1: i32) -> (i32, i32, i32) {
    %c0_i32 = arith.constant 0 : i32
    %c0_i32_0 = arith.constant 0 : i32
    return %arg0, %c0_i32, %arg1 : i32, i32, i32
  }
}

</mosaic_0001>

<bundles_post_ra>
// kernel: downsample_c.1
= control target key start
LH: loop header
LB: loop body
LE: loop exit
PB: predicated region body
PF: predicated region fallthrough
CT: control target
= control target key end

     0   :  { %s373_s9 = smov 0   ;;  %s375_s10 = smov 0   ;;  %s409_s0 = inlined_call_operand.vmem [shape: f32[8,4], index: 0, kind: input, shape index: {}]   ;;  %s410_s1 = inlined_call_operand.vmem [shape: f32[2,4,64], index: 1, kind: input, shape index: {}]   ;;  %s411_s2 = inlined_call_operand.vmem [shape: f32[2,8,64], index: 2, kind: output, shape index: {}]  }
   0x1   :  { %s377_s11 = smov 0  }
   0x2 LB: > { %s24_s12 = sadd.s32 1, %s348_s10  ;;  %p292_p0 = scmp.ge.s32.totalorder %s352_s11, 1  ;;  %s352_s11 = sphi %s377_s11, %s12_s11   ;;  %s348_s10 = sphi %s375_s10, %s413_s10   ;;  %s344_s9 = sphi %s373_s9, %s412_s9  }
   0x3   : > { %p26_p1 = scmp.ge.s32.totalorder %s24_s12, 2  ;;  %p130_p2 = scmp.lt.s32.totalorder %s352_s11, 3 }
   0x5   : > { %s415_s12 = smov (%p26_p1, %s24_s12), 0  ;;  %p131_p3 = pnand %p292_p0, %p130_p2 }
   0x6   : > { %v170_v0 = vld [vmem:[%s409_s0] sm:$0xff] (!%p131_p3)  ;;  %v354_v1 = vmov (!%p131_p3), 0   ;;  %v355_v2 = vmov (!%p131_p3), 2   ;;  %v356_v3 = vmov (!%p131_p3), 1   ;;  %v357_v4 = vmov (!%p131_p3), 3   ;;  %p156_p4 = scmp.lt.s32.totalorder (!%p131_p3), %s344_s9, 1 }
   0x7   : > { %134 = sbr.rel (%p131_p3) target bundleno = 150 (0x96), region = 28  ;;  %325 = vset.pattern.permute.xlu0 (!%p131_p3), %v354_v1  ;;  %327 = vset.pattern.permute.xlu1 (!%p131_p3), %v355_v2  ;;  %v177_v5 = vlaneseq (!%p131_p3)  ;;  %vm212_vm0 = vcmask (!%p131_p3), 523264  }
   0x8   : > { %174 = vperm.xlu0 (!%p131_p3), %325, %v170_v0   ;;  %193 = vperm.xlu1 (!%p131_p3), %327, %v170_v0  }
   0x9   : > { %v178_v6 = vshrl.u32 (!%p131_p3), %v177_v5, 7 }
   0xb   : > { %v179_v7 = vsub.s32 (!%p131_p3), 0, %v178_v6  ;;  %v188_v8 = vsub.s32 (!%p131_p3), 1, %v178_v6  ;;  %v198_v11 = vsub.s32 (!%p131_p3), 2, %v178_v6  ;;  %v208_v13 = vsub.s32 (!%p131_p3), 3, %v178_v6 }
   0xc   : > { %326 = vset.pattern.permute.xlu0 (!%p131_p3), %v356_v3  ;;  %328 = vset.pattern.permute.xlu1 (!%p131_p3), %v357_v4 }
   0xd   : > { %183 = vperm.xlu0 (!%p131_p3), %326, %v170_v0   ;;  %203 = vperm.xlu1 (!%p131_p3), %328, %v170_v0  }
   0xe   : > { %s417_s9 = smov (!%p156_p4, %s344_s9), 1 }
   0xf   : > { %s293_s15 = sshll.u32 %s417_s9, 2  ;;  %s294_s19 = sshll.u32 %s417_s9, 3 }
  0x10   : > { %s162_s18 = scalar_lea.vmem %s410_s1, %s293_s15  ;;  %s169_s22 = scalar_lea.vmem %s411_s2, %s294_s19 }
  0x11   : > { %329 = vset.pattern.permute.xlu0 %v357_v4  ;;  %v171_v9 = vld [vmem:[%s162_s18] sm:$0xf] }
  0x12   : > { %v180_v14 = vrot.slane %v171_v9, %v179_v7  ;;  %v189_v15 = vrot.slane %v171_v9, %v188_v8  ;;  %v199_v16 = vrot.slane %v171_v9, %v198_v11  ;;  %v209_v17 = vrot.slane %v171_v9, %v208_v13 }
  0x87   : > { %v175_v10 = vpop.permute.xlu0 %174  ;;  %v194_v12 = vpop.permute.xlu1 %193 }
  0x88   : > { %v181_v20 = vmul.f32 %v180_v14, %v175_v10  ;;  %v200_v22 = vmul.f32 %v199_v16, %v194_v12 }
  0x8c   : > { %v184_v18 = vpop.permute.xlu0 %183  ;;  %v204_v19 = vpop.permute.xlu1 %203 }
  0x8d   : > { %v190_v21 = vmul.f32 %v189_v15, %v184_v18  ;;  %v210_v24 = vmul.f32 %v209_v17, %v204_v19 }
  0x8f   : > { %v191_v23 = vadd.f32 %v190_v21, %v181_v20 }
  0x91   : > { %v201_v25 = vadd.f32 %v200_v22, %v191_v23 }
  0x93   : > { %v211_v26 = vadd.f32 %v210_v24, %v201_v25 }
  0x95   : > { %213 = vst.msk [vmem:[%s169_s22] sm:$0xff] %vm212_vm0, %v211_v26 }
  0x96 PF: > { %s12_s11 = sadd.s32 1, %s352_s11   ;;  %s412_s9 = smov %s348_s10 }
  0x97   : > { %p9_p5 = scmp.ge.s32.totalorder %s12_s11, 4   ;;  %s413_s10 = smov %s415_s12 }
  0x99   :  { %11 = sbr.rel (!%p9_p5) target bundleno = 2 (0x2), region = 58 }

</bundles_post_ra>
